<compile_context>
chip_gen: v7x
topology: tpu7x:2x2x1
jax: 0.10.0
libtpu: 0.0.40
codegen_flags: <defaults>
</compile_context>

<pallas_src>
import functools
import math

import jax
import jax.numpy as jnp
from jax.experimental import pallas as pl
from jax.experimental.pallas import tpu as pltpu


def _round_up(v, m):
    return -(-v // m) * m


def _chip_info():
    """Trace-time per-generation tiling budgets + compute-dtype capability."""
    kind = ""
    try:
        kind = jax.devices()[0].device_kind.lower()
    except Exception:
        pass
    bf16_ok = ("v6" in kind) or ("v7" in kind)
    if "v7" in kind:
        # v7x: ~3.2 TB/s HBM but only 64 MiB VMEM per TensorCore -> big blocks, tight cap.
        return {"target_block": 8 << 20, "budget": 40 << 20, "vmem_cap": 48 << 20,
                "bf16_ok": bf16_ok}
    if "v6" in kind:
        # v6e: 128 MiB VMEM, ~1.4 TB/s HBM.
        return {"target_block": 8 << 20, "budget": 48 << 20, "vmem_cap": 96 << 20,
                "bf16_ok": bf16_ok}
    # v5e / older / unknown: conservative blocks, f32 compute (no bf16 VPU/EUP).
    return {"target_block": 4 << 20, "budget": 24 << 20, "vmem_cap": 64 << 20,
            "bf16_ok": bf16_ok}


def _dyt_kernel(alpha_ref, p_ref, x_ref, o_ref, *, param_layout, compute_dtype):
    # alpha_ref: SMEM scalar (1,), f32.
    # p_ref: packed params. 'lane' layout -> (3, L) rows = [s1, s2, shift];
    #                        'row'  layout -> (tile_r, 3) cols = [s1, s2, shift].
    # x_ref / o_ref: VMEM (tile_r, L).
    alpha = alpha_ref[0].astype(compute_dtype)
    x = x_ref[...].astype(compute_dtype)
    if param_layout == "lane":
        s1, s2, sh = p_ref[0:1, :], p_ref[1:2, :], p_ref[2:3, :]
    else:
        s1, s2, sh = p_ref[:, 0:1], p_ref[:, 1:2], p_ref[:, 2:3]
    y = jnp.tanh(alpha * x) * s1 + x * s2 + sh
    o_ref[...] = y.astype(o_ref.dtype)


def _pick_fold(n_rows, c, max_lane=8192):
    """Fold factor f (consecutive channel-vectors per output row) for channels_last.

    Prefers f with f*c a multiple of 128 (full-width vst) dividing n_rows; otherwise
    the widest divisor of n_rows with f*c <= max_lane (wide-but-unaligned beats the
    old fold=1 masked-store cliff).
    """
    base = math.lcm(c, 128) // c
    max_k = max(1, max_lane // max(1, base * c))
    for k in range(max_k, 0, -1):
        f = base * k
        if f <= n_rows and n_rows % f == 0:
            return f
    # TODO(synk): could instead pad n_rows to a multiple of `base` and strip (extra
    # HBM copy); wide-but-unaligned is usually the better trade for this shape class.
    for f in range(min(n_rows, max(1, max_lane // max(1, c))), 0, -1):
        if n_rows % f == 0:
            return f
    return 1


def _pick_channel_group(b, c, s, max_lane=32768):
    """Smallest m dividing b with (m*c*s) % 128 == 0 and lane width m*c*s <= max_lane."""
    if c * s > max_lane:
        return None
    for m in range(1, b + 1):
        if b % m == 0 and (m * c * s) % 128 == 0 and m * c * s <= max_lane:
            return m
    return None


def _pick_tile_rows(r, lane, x_itemsize, p_itemsize, layout, info):
    """Rows per block sized against the VMEM-padded footprint: 2x in + 2x out + 2x params."""
    sub = max(8, 32 // x_itemsize)                    # sublane packing: f32 8, bf16 16, int8 32
    lane_pad = _round_up(lane, 128)
    row_x = lane_pad * x_itemsize
    per_row = 4 * row_x                               # double-buffered x input + output
    fixed = 0
    if layout == "row":
        per_row += 2 * 128 * p_itemsize               # (tr,3) param block lane-pads to 128
    else:
        fixed += 2 * 8 * lane_pad * p_itemsize        # (3,L) param block sublane-pads to 8
    tr = min(max(1, info["target_block"] // row_x),
             max(1, (info["budget"] - fixed) // per_row))
    tr = max(sub, (tr // sub) * sub)
    if tr >= r:
        if r > sub:
            # Keep >=2 grid steps so the parallel axis can shard across v7x's 2 TCs.
            tr = min(r, _round_up(_round_up(r, 2) // 2, sub))
        else:
            tr = r
    return tr, lane_pad


def _dyt_pallas_2d(x2d, alpha, params, layout, compute_dtype, info):
    """x2d: [R, L]. params: (3, L) if layout=='lane' else (R, 3)."""
    r, l = x2d.shape
    x_it = jnp.dtype(x2d.dtype).itemsize
    p_it = jnp.dtype(params.dtype).itemsize
    tr, lane_pad = _pick_tile_rows(r, l, x_it, p_it, layout, info)
    grid = (pl.cdiv(r, tr),)   # no host-side padding; Pallas masks the partial tail block

    if layout == "lane":
        p_spec = pl.BlockSpec((3, l), lambda i: (0, 0))
    else:  # 'row'
        p_spec = pl.BlockSpec((tr, 3), lambda i: (i, 0))

    # Real VMEM footprint (double-buffered x in/out + packed params) + slack.
    x_block_bytes = tr * lane_pad * x_it
    p_block_bytes = (tr * 128 * p_it) if layout == "row" else (8 * lane_pad * p_it)
    footprint = 4 * x_block_bytes + 2 * p_block_bytes + (2 << 20)
    vmem_limit = int(min(max(footprint, 16 << 20), info["vmem_cap"]))

    kernel = functools.partial(_dyt_kernel, param_layout=layout, compute_dtype=compute_dtype)
    return pl.pallas_call(
        kernel,
        out_shape=jax.ShapeDtypeStruct((r, l), x2d.dtype),
        grid=grid,
        in_specs=[
            pl.BlockSpec(memory_space=pltpu.MemorySpace.SMEM),   # alpha (1,)
            p_spec,                                              # packed s1/s2/shift
            pl.BlockSpec((tr, l), lambda i: (i, 0)),             # x tile
        ],
        out_specs=pl.BlockSpec((tr, l), lambda i: (i, 0)),
        compiler_params=pltpu.CompilerParams(
            dimension_semantics=("parallel",),
            vmem_limit_bytes=vmem_limit,
        ),
    )(alpha, params, x2d)


def dyt_forward(x, alpha, beta, scale, shift, data_format="channels_last"):
    """JAX/Pallas equivalent of DyT.forward.

    x: 2D [B, C], 3D [B, L, C], or 4D ([B, C, H, W] if channels_first,
       [B, H, W, C] if channels_last). alpha, beta: (1,). scale, shift: (dim,).
    """
    info = _chip_info()
    compute_dtype = jnp.float32
    if x.dtype == jnp.bfloat16 and info["bf16_ok"]:
        compute_dtype = jnp.bfloat16          # bf16 VPU/EUP on v6e/v7x; f32 elsewhere

    alpha32 = jnp.asarray(alpha).reshape(1).astype(jnp.float32)
    s1 = (beta * scale).reshape(-1).astype(compute_dtype)           # beta * scale
    s2 = ((1.0 - beta) * scale).reshape(-1).astype(compute_dtype)   # (1 - beta) * scale
    sh = jnp.asarray(shift).reshape(-1).astype(compute_dtype)

    if x.ndim == 4 and data_format == "channels_first":
        b, c, h, w = x.shape
        s = h * w
        if s % 128 == 0:
            # Transpose-free NCHW: [B,C,H,W] -> [B*C, H*W] (free reshape), lane is
            # 128-aligned, per-channel params become one packed per-row (R,3) block.
            x2d = x.reshape(b * c, s)
            p = jnp.stack([jnp.tile(s1, b), jnp.tile(s2, b), jnp.tile(sh, b)], axis=1)
            out = _dyt_pallas_2d(x2d, alpha32, p, "row", compute_dtype, info)
            return out.reshape(b, c, h, w)
        m = _pick_channel_group(b, c, s)
        if m is not None:
            # Misaligned H*W: fold m whole batches (m*C channels) per row so the lane
            # width m*C*H*W is a multiple of 128; params become a (3, lane) pattern.
            lane = m * c * s
            x2d = x.reshape(b // m, lane)

            def lane_param(v):
                return jnp.tile(jnp.repeat(v, s), m)

            p = jnp.stack([lane_param(s1), lane_param(s2), lane_param(sh)], axis=0)
            out = _dyt_pallas_2d(x2d, alpha32, p, "lane", compute_dtype, info)
            return out.reshape(b, c, h, w)
        # TODO(synk): misaligned H*W with no usable batch fold -> masked-store tail;
        # consider padding the spatial axis if this shape ever runs hot.
        x2d = x.reshape(b * c, s)
        p = jnp.stack([jnp.tile(s1, b), jnp.tile(s2, b), jnp.tile(sh, b)], axis=1)
        out = _dyt_pallas_2d(x2d, alpha32, p, "row", compute_dtype, info)
        return out.reshape(b, c, h, w)

    # channels_last semantics (2D / 3D / 4D): lane-dense fold of the channel axis.
    c = x.shape[-1]
    lead = x.shape[:-1]
    n = math.prod(lead)
    fold = _pick_fold(n, c)
    lane = fold * c
    x2d = x.reshape(n // fold, lane)                 # contiguous -> free reshape
    p = jnp.stack([jnp.tile(s1, fold), jnp.tile(s2, fold), jnp.tile(sh, fold)], axis=0)
    out = _dyt_pallas_2d(x2d, alpha32, p, "lane", compute_dtype, info)
    return out.reshape(*lead, c)


def _dyt_reference(x, alpha, beta, scale, shift, data_format="channels_last"):
    """Pure-JAX reference mirroring the PyTorch module."""
    if x.ndim == 4 and data_format == "channels_first":
        xc = jnp.transpose(x, (0, 2, 3, 1))
        t = jnp.tanh(alpha * xc)
        y = beta * t + (1.0 - beta) * xc
        y = y * scale + shift
        return jnp.transpose(y, (0, 3, 1, 2))
    t = jnp.tanh(alpha * x)
    y = beta * t + (1.0 - beta) * x
    return y * scale + shift


if __name__ == "__main__":
    key = jax.random.PRNGKey(0)
    k1, k2, k3, k4, k5, k6 = jax.random.split(key, 6)

    # Module params (DyT(dim=4, alpha=1.0, beta=0.5)), deterministic but non-trivial.
    dim = 4
    alpha = jnp.ones((1,), jnp.float32) * 1.0
    beta = jnp.ones((1,), jnp.float32) * 0.5
    scale = jnp.ones((dim,), jnp.float32) + 0.1 * jax.random.normal(k1, (dim,), jnp.float32)
    shift = jnp.zeros((dim,), jnp.float32) + 0.1 * jax.random.normal(k2, (dim,), jnp.float32)

    # 1) NCHW channels_first, 128-aligned spatial (packed per-row param path).
    x = jax.random.normal(k3, (2, dim, 16, 16), jnp.float32)
    out = jax.block_until_ready(
        dyt_forward(x, alpha, beta, scale, shift, data_format="channels_first"))
    ref = _dyt_reference(x, alpha, beta, scale, shift, data_format="channels_first")
    assert out.shape == x.shape
    assert jnp.allclose(out, ref, atol=1e-5, rtol=1e-5), "NCHW mismatch vs reference"

    # 2) 3D [B, L, C] channels_last (wide-but-unaligned fold fallback).
    x3 = jax.random.normal(k4, (2, 8, dim), jnp.float32)
    out3 = jax.block_until_ready(dyt_forward(x3, alpha, beta, scale, shift))
    ref3 = _dyt_reference(x3, alpha, beta, scale, shift)
    assert jnp.allclose(out3, ref3, atol=1e-5, rtol=1e-5), "3D mismatch vs reference"

    # 3) 4D NHWC channels_last (128-aligned lane-dense fold).
    x4 = jax.random.normal(k5, (2, 16, 16, dim), jnp.float32)
    out4 = jax.block_until_ready(
        dyt_forward(x4, alpha, beta, scale, shift, data_format="channels_last"))
    ref4 = _dyt_reference(x4, alpha, beta, scale, shift, data_format="channels_last")
    assert jnp.allclose(out4, ref4, atol=1e-5, rtol=1e-5), "NHWC mismatch vs reference"

    # 4) NCHW channels_first with misaligned H*W (14x14): batch-folded lane-dense path.
    x5 = jax.random.normal(k6, (8, dim, 14, 14), jnp.float32)
    out5 = jax.block_until_ready(
        dyt_forward(x5, alpha, beta, scale, shift, data_format="channels_first"))
    ref5 = _dyt_reference(x5, alpha, beta, scale, shift, data_format="channels_first")
    assert jnp.allclose(out5, ref5, atol=1e-5, rtol=1e-5), "NCHW misaligned mismatch"

    # 5) bf16 NHWC: exercises the chip-gated bf16 compute path (falls back to f32 on v5e).
    x6 = x4.astype(jnp.bfloat16)
    out6 = jax.block_until_ready(
        dyt_forward(x6, alpha, beta, scale, shift, data_format="channels_last"))
    ref6 = _dyt_reference(x6.astype(jnp.float32), alpha, beta, scale, shift,
                          data_format="channels_last")
    assert out6.dtype == jnp.bfloat16
    assert jnp.allclose(out6.astype(jnp.float32), ref6, atol=5e-2, rtol=5e-2), "bf16 mismatch"

    print("KERNEL_OK")
</pallas_src>

<mosaic_0001>
module attributes {stable_mosaic.version = 11 : i64} {
  func.func @_dyt_kernel(%arg0: i32, %arg1: memref<1xf32, #tpu.memory_space<smem>>, %arg2: memref<8x3xf32, #tpu.memory_space<vmem>>, %arg3: memref<8x256xf32, #tpu.memory_space<vmem>>, %arg4: memref<8x256xf32, #tpu.memory_space<vmem>>) attributes {dimension_semantics = [#tpu.dimension_semantics<parallel>], iteration_bounds = array<i64: 1>, scalar_prefetch = 0 : i64, scratch_operands = 0 : i64, tpu.core_type = #tpu.core_type<tc>, window_params = [{transform_indices = @transform_0, window_bounds = array<i64: 1>}, {transform_indices = @transform_1, window_bounds = array<i64: 8, 3>}, {transform_indices = @transform_2, window_bounds = array<i64: 8, 256>}, {transform_indices = @transform_3, window_bounds = array<i64: 8, 256>}]} {
    %c0 = arith.constant 0 : index
    %0 = memref.load %arg1[%c0] : memref<1xf32, #tpu.memory_space<smem>>
    %c0_0 = arith.constant 0 : index
    %c0_1 = arith.constant 0 : index
    %1 = vector.load %arg3[%c0_0, %c0_1] : memref<8x256xf32, #tpu.memory_space<vmem>>, vector<8x256xf32>
    %c0_2 = arith.constant 0 : index
    %c0_3 = arith.constant 0 : index
    %2 = vector.load %arg2[%c0_2, %c0_3] : memref<8x3xf32, #tpu.memory_space<vmem>>, vector<8x1xf32>
    %c0_4 = arith.constant 0 : index
    %c1 = arith.constant 1 : index
    %3 = vector.load %arg2[%c0_4, %c1] : memref<8x3xf32, #tpu.memory_space<vmem>>, vector<8x1xf32>
    %c0_5 = arith.constant 0 : index
    %c2 = arith.constant 2 : index
    %4 = vector.load %arg2[%c0_5, %c2] : memref<8x3xf32, #tpu.memory_space<vmem>>, vector<8x1xf32>
    %5 = vector.broadcast %0 : f32 to vector<8x256xf32>
    %6 = arith.mulf %5, %1 : vector<8x256xf32>
    %7 = math.tanh %6 : vector<8x256xf32>
    %8 = vector.broadcast %2 : vector<8x1xf32> to vector<8x256xf32>
    %9 = arith.mulf %7, %8 : vector<8x256xf32>
    %10 = vector.broadcast %3 : vector<8x1xf32> to vector<8x256xf32>
    %11 = arith.mulf %1, %10 : vector<8x256xf32>
    %12 = arith.addf %9, %11 : vector<8x256xf32>
    %13 = vector.broadcast %4 : vector<8x1xf32> to vector<8x256xf32>
    %14 = arith.addf %12, %13 : vector<8x256xf32>
    %c0_6 = arith.constant 0 : index
    %c0_7 = arith.constant 0 : index
    %15 = vector.load %arg4[%c0_6, %c0_7] : memref<8x256xf32, #tpu.memory_space<vmem>>, vector<8x256xf32>
    tpu.vector_store %arg4[%c0_6, %c0_7], %14 {strides = array<i32>} : memref<8x256xf32, #tpu.memory_space<vmem>>, vector<8x256xf32>,
    return
  }
  func.func @transform_0(%arg0: i32) -> i32 {
    %c0_i32 = arith.constant 0 : i32
    %c0_i32_0 = arith.constant 0 : i32
    return %c0_i32 : i32
  }
  func.func @transform_1(%arg0: i32) -> (i32, i32) {
    %c0_i32 = arith.constant 0 : i32
    %c0_i32_0 = arith.constant 0 : i32
    return %arg0, %c0_i32 : i32, i32
  }
  func.func @transform_2(%arg0: i32) -> (i32, i32) {
    %c0_i32 = arith.constant 0 : i32
    %c0_i32_0 = arith.constant 0 : i32
    return %arg0, %c0_i32 : i32, i32
  }
  func.func @transform_3(%arg0: i32) -> (i32, i32) {
    %c0_i32 = arith.constant 0 : i32
    %c0_i32_0 = arith.constant 0 : i32
    return %arg0, %c0_i32 : i32, i32
  }
}

</mosaic_0001>

<bundles_post_ra>
// kernel: tpu_custom_call.1
= control target key start
LH: loop header
LB: loop body
LE: loop exit
PB: predicated region body
PF: predicated region fallthrough
CT: control target
= control target key end

     0   :  { %v98_v1 = vmov 0   ;;  %v99_v2 = vmov 2   ;;  %s146_s0 = inlined_call_operand.<no memory space> [shape: f32[1], index: 0, kind: input, shape index: {}]   ;;  %s147_s1 = inlined_call_operand.vmem [shape: f32[8,3], index: 1, kind: input, shape index: {}]   ;;  %s148_s2 = inlined_call_operand.vmem [shape: f32[8,256], index: 2, kind: input, shape index: {}]   ;;  %s149_s3 = inlined_call_operand.hbm [shape: f32[8,256], index: 3, kind: output, shape index: {}]  }
   0x1   :  { %v19_v0 = vld [vmem:[%s147_s1] sm:$0xff]  ;;  %66 = vset.pattern.permute.xlu0 %v98_v1  ;;  %68 = vset.pattern.permute.xlu1 %v99_v2 }
   0x2   :  { %9 = vsyncpa [#allocation4], 0  ;;  %27 = vperm.xlu0 %66, %v19_v0   ;;  %41 = vperm.xlu1 %68, %v19_v0   ;;  %v100_v3 = vmov 1   ;;  %v20_v4 = vstv %s146_s0  ;;  %v17_v5 = vld [vmem:[%s148_s2] sm:$0xff]  ;;  %v18_v6 = vld [vmem:[%s148_s2 + $0x8] sm:$0xff]  ;;  %s101_s0 = smov [#allocation3]  }
   0x3   :  { %v21_v7 = vmul.f32 %v20_v4, %v17_v5  ;;  %v22_v8 = vmul.f32 %v20_v4, %v18_v6  ;;  %s54_s19 = sshll.u32 %s101_s0, 4  ;;  %s55_s19 = int_to_ptr.vmem [resolvable:$true] %s54_s19 }
   0x4   :  { %s74_s2 = scalar_lea.vmem %s55_s19, 256  ;;  %p79_p1 = scmp.lt.s32.totalorder %s55_s19, %s55_s19 }
   0x5   :  { %70 = vtanh.f32 %v21_v7  ;;  %p75_p0 = scmp.ne.s32.totalorder %s55_s19, %s74_s2  ;;  %p80_p2 = scmp.lt.s32.totalorder %s74_s2, %s74_s2 }
   0x6   :  { %67 = vset.pattern.permute.xlu0 %v100_v3  ;;  %72 = vtanh.f32 %v22_v8 }
   0x7   :  { %33 = vperm.xlu0 %67, %v19_v0   ;;  %p81_p3 = por %p80_p2, %p79_p1 }
   0x9   :  { %p82_p4 = pnand %p81_p3, %p75_p0 }
   0xb   :  { %69 = vset.pattern.permute.xlu0 %v99_v2 }
   0xf   :  { %v71_v10 = vpop.eup %70 }
  0x10   :  { %v73_v11 = vpop.eup %72 }
  0x81   :  { %v28_v9 = vpop.permute.xlu0 %27  ;;  %v42_v17 = vpop.permute.xlu1 %41 }
  0x82   :  { %v30_v15 = vmul.f32 %v71_v10, %v28_v9  ;;  %v31_v16 = vmul.f32 %v73_v11, %v28_v9 }
  0x86   :  { %v34_v12 = vpop.permute.xlu0 %33 }
  0x87   :  { %v36_v13 = vmul.f32 %v34_v12, %v17_v5  ;;  %v37_v14 = vmul.f32 %v34_v12, %v18_v6 }
  0x89   :  { %v38_v18 = vadd.f32 %v36_v13, %v30_v15  ;;  %v39_v19 = vadd.f32 %v37_v14, %v31_v16 }
  0x8b   :  { %v44_v20 = vadd.f32 %v42_v17, %v38_v18  ;;  %v45_v21 = vadd.f32 %v42_v17, %v39_v19 }
  0x8d   :  { %46 = vst [vmem:[#allocation3] sm:$0xff] %v44_v20  ;;  %47 = vst [vmem:[#allocation3 + $0x8] sm:$0xff] %v45_v21 }
  0x8e   :  { %85 = shalt.err (!%p82_p4)
}
  0x8f   :  { %s86_s22 = scalar_lea.hbm %s149_s3, 256 }
  0x90   :  { %p87_p5 = scmp.ne.s32.totalorder %s149_s3, %s86_s22  ;;  %p90_p6 = scmp.lt.u32.totalorder %s86_s22, %s149_s3 }
  0x92   :  { %p92_p7 = pnand %p90_p6, %p87_p5 }
  0x94   :  { %95 = shalt.err (!%p92_p7)
}
  0x95   :  { %57 = dma.vmem_to_hbm [thread:$0]  %s55_s19, 256, %s149_s3, [#allocation4]  }
  0x96   :  { %96 = dma.done.wait [#allocation4], 256  }
  0x97   :  { %97 = vsyncadd [#allocation4], 4294967040 }
  0x98   :  { %61 = vsyncpa [#allocation4], 1 }

</bundles_post_ra>
